<compile_context>
chip_gen: v7x
topology: tpu7x:2x2x1
jax: 0.10.0
libtpu: 0.0.40
codegen_flags: <defaults>
</compile_context>

<pallas_src>
import math

import numpy as np
import jax
import jax.numpy as jnp
from jax.experimental import pallas as pl
from jax.experimental.pallas import tpu as pltpu


# ----------------------------- Pallas kernel -----------------------------

def _make_fused_kernel(task_slices):
    """Build the fused backbone + all-decoders + shared-upsample kernel.

    `task_slices` is a static tuple of (start, end) channel ranges into the
    concatenated decoder output, one per task (one output ref per task).
    """

    def kernel(xcol_ref, wb_ref, bb_ref, wd_ref, bd_ref, ut_ref, *o_refs):
        # xcol_ref : (1, K, Hf*Wf)      bf16 im2col activations, one batch elem
        # wb_ref   : (Ch, K)            bf16 backbone conv weights (im2col layout)
        # bb_ref   : (Ch, 1)            f32 backbone bias
        # wd_ref   : (Ct_sum, Ch)       bf16 concatenated decoder weights (transposed)
        # bd_ref   : (Ct_sum, 1)        f32 concatenated decoder biases
        # ut_ref   : (Hf*Wf, Ho*Wo)     bf16 kron(A_h, A_w)^T bilinear matrix
        # o_refs   : per task (1, Ct_t, Ho*Wo) f32, NCHW-flattened & lane-dense

        # Backbone conv as channel-first im2col matmul: (Ch, K) @ (K, HWf).
        feat = jnp.dot(wb_ref[...], xcol_ref[0],
                       preferred_element_type=jnp.float32)
        feat = jnp.maximum(feat + bb_ref[...], 0.0).astype(jnp.bfloat16)

        # All task decoders (1x1 conv == channel contraction) in one matmul:
        # (Ct_sum, Ch) @ (Ch, HWf).
        d = jnp.dot(wd_ref[...], feat, preferred_element_type=jnp.float32)

        # One shared bilinear upsample for every task channel:
        # (Ct_sum, HWf) @ (HWf, HWo).
        up = jnp.dot(d.astype(jnp.bfloat16), ut_ref[...],
                     preferred_element_type=jnp.float32)

        # Bias after upsample is exact: the interpolation matrix rows sum to 1.
        up = up + bd_ref[...]

        # Per-task outputs written directly (lane-dense 256-wide stores); the
        # channel split is a static value slice, no post-kernel relayout copy.
        for o_ref, (s, e) in zip(o_refs, task_slices):
            o_ref[0] = up[s:e]

    return kernel


# ----------------------------- wrapper (glue) -----------------------------

def multitask_forward_fused(xcol, wb_t, bb, wd_t, bd, ut, task_slices, out_hw):
    """Single fused Pallas launch for the whole multitask forward pass.

    xcol : (N, K, Hf*Wf) bf16    wb_t : (Ch, K) bf16     bb : (Ch, 1) f32
    wd_t : (Ct_sum, Ch) bf16     bd : (Ct_sum, 1) f32    ut : (Hf*Wf, Ho*Wo) bf16
    Returns a tuple of per-task arrays, each (N, Ct_t, Ho*Wo) f32.
    """
    N, K, HWf = xcol.shape
    Ch = wb_t.shape[0]
    Ct = wd_t.shape[0]
    Ho, Wo = out_hw
    HWo = Ho * Wo

    out_shapes = tuple(jax.ShapeDtypeStruct((N, e - s, HWo), jnp.float32)
                       for (s, e) in task_slices)
    out_specs = tuple(pl.BlockSpec((1, e - s, HWo), lambda n: (n, 0, 0))
                      for (s, e) in task_slices)

    flops = 2 * N * (Ch * K * HWf + Ct * Ch * HWf + Ct * HWf * HWo)
    bytes_accessed = (xcol.size * 2 + wb_t.size * 2 + bb.size * 4
                      + wd_t.size * 2 + bd.size * 4 + ut.size * 2
                      + sum(N * (e - s) * HWo * 4 for (s, e) in task_slices))
    cost = pl.CostEstimate(flops=int(flops), transcendentals=0,
                           bytes_accessed=int(bytes_accessed))

    return pl.pallas_call(
        _make_fused_kernel(task_slices),
        out_shape=out_shapes,
        grid=(N,),
        in_specs=[
            pl.BlockSpec((1, K, HWf), lambda n: (n, 0, 0)),   # per-batch activations
            pl.BlockSpec((Ch, K), lambda n: (0, 0)),          # backbone weights
            pl.BlockSpec((Ch, 1), lambda n: (0, 0)),          # backbone bias
            pl.BlockSpec((Ct, Ch), lambda n: (0, 0)),         # fused decoder weights
            pl.BlockSpec((Ct, 1), lambda n: (0, 0)),          # fused decoder biases
            pl.BlockSpec((HWf, HWo), lambda n: (0, 0)),       # bilinear matrix^T
        ],
        out_specs=out_specs,
        compiler_params=pltpu.CompilerParams(
            dimension_semantics=("parallel",)),
        cost_estimate=cost,
    )(xcol, wb_t, bb, wd_t, bd, ut)


def _bilinear_matrix_np(out_size, in_size):
    """Row-stochastic matrix matching F.interpolate(mode='bilinear',
    align_corners=False) along one axis: y_out = A @ y_in.  Host-side numpy."""
    scale = in_size / out_size
    A = np.zeros((out_size, in_size), dtype=np.float32)
    for o in range(out_size):
        src = (o + 0.5) * scale - 0.5
        src = max(src, 0.0)
        i0 = min(int(math.floor(src)), in_size - 1)
        i1 = min(i0 + 1, in_size - 1)
        lam = src - i0
        A[o, i0] += 1.0 - lam
        A[o, i1] += lam
    # Row-stochastic by construction; the kernel's bias-after-upsample relies on
    # this (kron preserves it).  If this ever changes (e.g. anti-aliased
    # downsample), the bias must move before the upsample.
    assert np.allclose(A.sum(axis=1), 1.0), "bilinear matrix must be row-stochastic"
    return A


class MultiTaskModelPallas:
    """Multi-task baseline: shared encoder + task-specific decoders (Pallas)."""

    def __init__(self, params, tasks, *, stride=2, pad=1):
        assert set(params["decoders"].keys()) == set(tasks)
        self.tasks = tasks
        self.stride = stride
        self.pad = pad

        wb = params["backbone_w"]                      # (Ch, Cin, kh, kw)
        self.Ch, self.Cin, self.kh, self.kw = wb.shape
        # (Ch, K) with K ordered (kh, kw, cin) to match the im2col below.
        self.wb_t = jnp.transpose(wb, (0, 2, 3, 1)).reshape(self.Ch, -1)
        self.wb_t = self.wb_t.astype(jnp.bfloat16)
        self.bb = params["backbone_b"].reshape(self.Ch, 1).astype(jnp.float32)

        # Fuse all task decoders into one weight/bias (done once at init).
        ws, bs, slices = [], [], []
        off = 0
        for t in tasks:
            w, b = params["decoders"][t]               # w: (Ch, Ct), b: (Ct,)
            ws.append(w)
            bs.append(b)
            slices.append((off, off + w.shape[1]))
            off += w.shape[1]
        self.task_slices = tuple(slices)
        self.wd_t = jnp.concatenate(ws, axis=1).T.astype(jnp.bfloat16)   # (Ct_sum, Ch)
        self.bd = jnp.concatenate(bs, axis=0).reshape(-1, 1).astype(jnp.float32)

        self._u_cache = {}   # (out_hw, in_hw) -> transposed bilinear matrix

    def _upsample_matrix_t(self, out_hw, in_hw):
        key = (out_hw, in_hw)
        if key not in self._u_cache:
            ah = _bilinear_matrix_np(out_hw[0], in_hw[0])
            aw = _bilinear_matrix_np(out_hw[1], in_hw[1])
            u = np.kron(ah, aw)                        # (Ho*Wo, Hf*Wf)
            # TODO(synk): switch to a separable two-pass upsample at large H,W
            #             (dense kron grows ~H^4/2 bytes; v7x VMEM hits first).
            self._u_cache[key] = jnp.asarray(u.T, dtype=jnp.bfloat16)
        return self._u_cache[key]

    def _im2col(self, x_nchw):
        """NCHW im2col, K ordered (kh, kw, cin) -> (N, K, Hf*Wf) bf16.  No
        transpose needed: NCHW already puts spatial last (lane-dense)."""
        N, Cin, H, W = x_nchw.shape
        s, p, kh, kw = self.stride, self.pad, self.kh, self.kw
        Hf = (H + 2 * p - kh) // s + 1
        Wf = (W + 2 * p - kw) // s + 1
        xp = jnp.pad(x_nchw.astype(jnp.bfloat16),
                     ((0, 0), (0, 0), (p, p), (p, p)))
        cols = []
        for i in range(kh):
            for j in range(kw):
                cols.append(xp[:, :, i:i + s * Hf:s, j:j + s * Wf:s])
        # TODO(synk): for large inputs replace this XLA-side im2col (9x HBM
        #             blowup) with an in-kernel 9-tap accumulation.
        xcol = jnp.concatenate(cols, axis=1).reshape(N, kh * kw * Cin, Hf * Wf)
        return xcol, (Hf, Wf)

    def __call__(self, x_nchw):
        N, _, H, W = x_nchw.shape
        xcol, (Hf, Wf) = self._im2col(x_nchw)
        ut = self._upsample_matrix_t((H, W), (Hf, Wf))
        outs = multitask_forward_fused(xcol, self.wb_t, self.bb, self.wd_t,
                                       self.bd, ut, self.task_slices, (H, W))
        return {t: o.reshape(N, o.shape[1], H, W)   # contiguous, free reshape
                for t, o in zip(self.tasks, outs)}


# ----------------------------- pure-JAX reference -----------------------------

def reference_forward(x_nchw, params, tasks):
    N, C, H, W = x_nchw.shape
    feat = jax.lax.conv_general_dilated(
        x_nchw, params["backbone_w"], window_strides=(2, 2),
        padding=((1, 1), (1, 1)),
        dimension_numbers=("NCHW", "OIHW", "NCHW"))
    feat = jax.nn.relu(feat + params["backbone_b"][None, :, None, None])
    Hf, Wf = feat.shape[2], feat.shape[3]
    ah = jnp.asarray(_bilinear_matrix_np(H, Hf))
    aw = jnp.asarray(_bilinear_matrix_np(W, Wf))
    outs = {}
    for t in tasks:
        w, b = params["decoders"][t]
        d = jnp.einsum("nchw,ck->nkhw", feat, w) + b[None, :, None, None]
        up = jnp.einsum("oh,nkhw->nkow", ah, d)
        up = jnp.einsum("pw,nkow->nkop", aw, up)
        outs[t] = up
    return outs


# ----------------------------- main -----------------------------

if __name__ == "__main__":
    key = jax.random.PRNGKey(0)
    kx, kbw, kbb, kd = jax.random.split(key, 4)

    N, Cin, H, W = 2, 4, 16, 16
    Chid = 32
    tasks = ["segmentation", "depth"]
    task_channels = {"segmentation": 5, "depth": 1}

    params = {
        "backbone_w": 0.1 * jax.random.normal(kbw, (Chid, Cin, 3, 3), jnp.float32),
        "backbone_b": 0.1 * jax.random.normal(kbb, (Chid,), jnp.float32),
        "decoders": {},
    }
    for i, t in enumerate(tasks):
        kt_w, kt_b = jax.random.split(jax.random.fold_in(kd, i))
        ct = task_channels[t]
        params["decoders"][t] = (
            0.1 * jax.random.normal(kt_w, (Chid, ct), jnp.float32),
            0.1 * jax.random.normal(kt_b, (ct,), jnp.float32),
        )

    x = jax.random.normal(kx, (N, Cin, H, W), dtype=jnp.float32)

    model = MultiTaskModelPallas(params, tasks)
    outs = model(x)
    for t in tasks:
        jax.block_until_ready(outs[t])
        assert outs[t].shape == (N, task_channels[t], H, W)

    # Sanity check against a pure-JAX/XLA f32 reference.  Tolerance loosened to
    # 2e-2 relative to account for bf16 streamed operands (f32 accumulation).
    refs = reference_forward(x, params, tasks)
    for t in tasks:
        diff = float(jnp.max(jnp.abs(outs[t] - refs[t])))
        scale = max(1.0, float(jnp.max(jnp.abs(refs[t]))))
        assert diff <= 2e-2 * scale, f"mismatch for task {t}: {diff}"

    print("KERNEL_OK")
</pallas_src>

<mosaic_0001>
module attributes {stable_mosaic.version = 11 : i64} {
  func.func @kernel(%arg0: i32, %arg1: memref<1x36x64xbf16, #tpu.memory_space<vmem>>, %arg2: memref<32x36xbf16, #tpu.memory_space<vmem>>, %arg3: memref<32x1xf32, #tpu.memory_space<vmem>>, %arg4: memref<6x32xbf16, #tpu.memory_space<vmem>>, %arg5: memref<6x1xf32, #tpu.memory_space<vmem>>, %arg6: memref<64x256xbf16, #tpu.memory_space<vmem>>, %arg7: memref<1x5x256xf32, #tpu.memory_space<vmem>>, %arg8: memref<1x1x256xf32, #tpu.memory_space<vmem>>) attributes {dimension_semantics = [#tpu.dimension_semantics<parallel>], iteration_bounds = array<i64: 2>, scalar_prefetch = 0 : i64, scratch_operands = 0 : i64, tpu.core_type = #tpu.core_type<tc>, window_params = [{transform_indices = @transform_0, window_bounds = array<i64: 1, 36, 64>}, {pipeline_mode = #tpu.pipeline_mode<synchronous>, transform_indices = @transform_1, window_bounds = array<i64: 32, 36>}, {pipeline_mode = #tpu.pipeline_mode<synchronous>, transform_indices = @transform_2, window_bounds = array<i64: 32, 1>}, {pipeline_mode = #tpu.pipeline_mode<synchronous>, transform_indices = @transform_3, window_bounds = array<i64: 6, 32>}, {pipeline_mode = #tpu.pipeline_mode<synchronous>, transform_indices = @transform_4, window_bounds = array<i64: 6, 1>}, {pipeline_mode = #tpu.pipeline_mode<synchronous>, transform_indices = @transform_5, window_bounds = array<i64: 64, 256>}, {transform_indices = @transform_6, window_bounds = array<i64: 1, 5, 256>}, {transform_indices = @transform_7, window_bounds = array<i64: 1, 1, 256>}]} {
    %c0 = arith.constant 0 : index
    %c0_0 = arith.constant 0 : index
    %0 = vector.load %arg2[%c0, %c0_0] : memref<32x36xbf16, #tpu.memory_space<vmem>>, vector<32x36xbf16>
    %c0_1 = arith.constant 0 : index
    %c0_2 = arith.constant 0 : index
    %c0_3 = arith.constant 0 : index
    %1 = vector.load %arg1[%c0_1, %c0_2, %c0_3] : memref<1x36x64xbf16, #tpu.memory_space<vmem>>, vector<1x36x64xbf16>
    %2 = vector.shape_cast %1 : vector<1x36x64xbf16> to vector<36x64xbf16>
    %cst = arith.constant dense<0.000000e+00> : vector<32x64xf32>
    %3 = tpu.matmul %0, %2, %cst {dimension_numbers = #tpu.dot_dimension_numbers<[1], [0], [0], [1], [0, 0, 1, 1], [], []>} : vector<32x36xbf16>, vector<36x64xbf16>, vector<32x64xf32> -> vector<32x64xf32>
    %c0_4 = arith.constant 0 : index
    %c0_5 = arith.constant 0 : index
    %4 = vector.load %arg3[%c0_4, %c0_5] : memref<32x1xf32, #tpu.memory_space<vmem>>, vector<32x1xf32>
    %5 = vector.broadcast %4 : vector<32x1xf32> to vector<32x64xf32>
    %6 = arith.addf %3, %5 : vector<32x64xf32>
    %cst_6 = arith.constant 0.000000e+00 : f32
    %7 = vector.broadcast %cst_6 : f32 to vector<32x64xf32>
    %8 = arith.maximumf %6, %7 : vector<32x64xf32>
    %9 = arith.truncf %8 : vector<32x64xf32> to vector<32x64xbf16>
    %c0_7 = arith.constant 0 : index
    %c0_8 = arith.constant 0 : index
    %10 = vector.load %arg4[%c0_7, %c0_8] : memref<6x32xbf16, #tpu.memory_space<vmem>>, vector<6x32xbf16>
    %cst_9 = arith.constant dense<0.000000e+00> : vector<6x64xf32>
    %11 = tpu.matmul %10, %9, %cst_9 {dimension_numbers = #tpu.dot_dimension_numbers<[1], [0], [0], [1], [0, 0, 1, 1], [], []>} : vector<6x32xbf16>, vector<32x64xbf16>, vector<6x64xf32> -> vector<6x64xf32>
    %12 = arith.truncf %11 : vector<6x64xf32> to vector<6x64xbf16>
    %c0_10 = arith.constant 0 : index
    %c0_11 = arith.constant 0 : index
    %13 = vector.load %arg6[%c0_10, %c0_11] : memref<64x256xbf16, #tpu.memory_space<vmem>>, vector<64x256xbf16>
    %cst_12 = arith.constant dense<0.000000e+00> : vector<6x256xf32>
    %14 = tpu.matmul %12, %13, %cst_12 {dimension_numbers = #tpu.dot_dimension_numbers<[1], [0], [0], [1], [0, 0, 1, 1], [], []>} : vector<6x64xbf16>, vector<64x256xbf16>, vector<6x256xf32> -> vector<6x256xf32>
    %c0_13 = arith.constant 0 : index
    %c0_14 = arith.constant 0 : index
    %15 = vector.load %arg5[%c0_13, %c0_14] : memref<6x1xf32, #tpu.memory_space<vmem>>, vector<6x1xf32>
    %16 = vector.broadcast %15 : vector<6x1xf32> to vector<6x256xf32>
    %17 = arith.addf %14, %16 : vector<6x256xf32>
    %18 = vector.extract_strided_slice %17 {offsets = [0, 0], sizes = [5, 256], strides = [1, 1]} : vector<6x256xf32> to vector<5x256xf32>
    %c0_15 = arith.constant 0 : index
    %c0_16 = arith.constant 0 : index
    %c0_17 = arith.constant 0 : index
    %19 = vector.load %arg7[%c0_15, %c0_16, %c0_17] : memref<1x5x256xf32, #tpu.memory_space<vmem>>, vector<1x5x256xf32>
    %20 = vector.shape_cast %19 : vector<1x5x256xf32> to vector<5x256xf32>
    %21 = vector.shape_cast %18 : vector<5x256xf32> to vector<1x5x256xf32>
    tpu.vector_store %arg7[%c0_15, %c0_16, %c0_17], %21 {strides = array<i32>} : memref<1x5x256xf32, #tpu.memory_space<vmem>>, vector<1x5x256xf32>,
    %22 = vector.extract_strided_slice %17 {offsets = [5, 0], sizes = [1, 256], strides = [1, 1]} : vector<6x256xf32> to vector<1x256xf32>
    %c0_18 = arith.constant 0 : index
    %c0_19 = arith.constant 0 : index
    %c0_20 = arith.constant 0 : index
    %23 = vector.load %arg8[%c0_18, %c0_19, %c0_20] : memref<1x1x256xf32, #tpu.memory_space<vmem>>, vector<1x1x256xf32>
    %24 = vector.shape_cast %23 : vector<1x1x256xf32> to vector<1x256xf32>
    %25 = vector.shape_cast %22 : vector<1x256xf32> to vector<1x1x256xf32>
    tpu.vector_store %arg8[%c0_18, %c0_19, %c0_20], %25 {strides = array<i32>} : memref<1x1x256xf32, #tpu.memory_space<vmem>>, vector<1x1x256xf32>,
    return
  }
  func.func @transform_0(%arg0: i32) -> (i32, i32, i32) {
    %c0_i32 = arith.constant 0 : i32
    %c0_i32_0 = arith.constant 0 : i32
    %c0_i32_1 = arith.constant 0 : i32
    return %arg0, %c0_i32, %c0_i32_0 : i32, i32, i32
  }
  func.func @transform_1(%arg0: i32) -> (i32, i32) {
    %c0_i32 = arith.constant 0 : i32
    %c0_i32_0 = arith.constant 0 : i32
    %c0_i32_1 = arith.constant 0 : i32
    return %c0_i32, %c0_i32_0 : i32, i32
  }
  func.func @transform_2(%arg0: i32) -> (i32, i32) {
    %c0_i32 = arith.constant 0 : i32
    %c0_i32_0 = arith.constant 0 : i32
    %c0_i32_1 = arith.constant 0 : i32
    return %c0_i32, %c0_i32_0 : i32, i32
  }
  func.func @transform_3(%arg0: i32) -> (i32, i32) {
    %c0_i32 = arith.constant 0 : i32
    %c0_i32_0 = arith.constant 0 : i32
    %c0_i32_1 = arith.constant 0 : i32
    return %c0_i32, %c0_i32_0 : i32, i32
  }
  func.func @transform_4(%arg0: i32) -> (i32, i32) {
    %c0_i32 = arith.constant 0 : i32
    %c0_i32_0 = arith.constant 0 : i32
    %c0_i32_1 = arith.constant 0 : i32
    return %c0_i32, %c0_i32_0 : i32, i32
  }
  func.func @transform_5(%arg0: i32) -> (i32, i32) {
    %c0_i32 = arith.constant 0 : i32
    %c0_i32_0 = arith.constant 0 : i32
    %c0_i32_1 = arith.constant 0 : i32
    return %c0_i32, %c0_i32_0 : i32, i32
  }
  func.func @transform_6(%arg0: i32) -> (i32, i32, i32) {
    %c0_i32 = arith.constant 0 : i32
    %c0_i32_0 = arith.constant 0 : i32
    %c0_i32_1 = arith.constant 0 : i32
    return %arg0, %c0_i32, %c0_i32_0 : i32, i32, i32
  }
  func.func @transform_7(%arg0: i32) -> (i32, i32, i32) {
    %c0_i32 = arith.constant 0 : i32
    %c0_i32_0 = arith.constant 0 : i32
    %c0_i32_1 = arith.constant 0 : i32
    return %arg0, %c0_i32, %c0_i32_0 : i32, i32, i32
  }
}

</mosaic_0001>

<bundles_post_ra>
// kernel: tpu_custom_call.1
= control target key start
LH: loop header
LB: loop body
LE: loop exit
PB: predicated region body
PF: predicated region fallthrough
CT: control target
= control target key end

     0   :  { %13 = vsyncpa [#allocation3], 0  ;;  %s1081_s0 = inlined_call_operand.vmem [shape: bf16[2,36,64], index: 0, kind: input, shape index: {}]   ;;  %s1082_s1 = inlined_call_operand.vmem [shape: bf16[32,36], index: 1, kind: input, shape index: {}]   ;;  %s1083_s2 = inlined_call_operand.vmem [shape: f32[32,1], index: 2, kind: input, shape index: {}]   ;;  %s1084_s3 = inlined_call_operand.vmem [shape: bf16[6,32], index: 3, kind: input, shape index: {}]   ;;  %s1085_s4 = inlined_call_operand.vmem [shape: f32[6,1], index: 4, kind: input, shape index: {}]   ;;  %s1086_s5 = inlined_call_operand.vmem [shape: bf16[64,256], index: 5, kind: input, shape index: {}]   ;;  %s1087_s6 = inlined_call_operand.vmem [shape: f32[2,5,256], index: 6, kind: output, shape index: {0}]   ;;  %s1088_s7 = inlined_call_operand.hbm [shape: f32[2,1,256], index: 7, kind: output, shape index: {1}]  }
   0x1   :  { %15 = vsyncpa [#allocation3 + $0x1], 0  ;;  %s924_s24 = smov 0   ;;  %s926_s25 = smov 0  }
   0x2   :  { %s928_s26 = smov 0   ;;  %s930_s27 = smov 0  }
   0x3 LB: > { %s945_s28 = sadd.s32 4294967295, %s877_s27   ;;  %s693_s29 = sadd.s32 4294967294, %s877_s27   ;;  %s877_s27 = sphi %s930_s27, %s1094_s27   ;;  %s873_s26 = sphi %s928_s26, %s1093_s26   ;;  %s869_s25 = sphi %s926_s25, %s1092_s25   ;;  %s865_s24 = sphi %s924_s24, %s1091_s24  }
   0x4   : > { %s949_s30 = sadd.s32 1, %s877_s27   ;;  %s185_s8 = sadd.s32 1, %s873_s26 }
   0x5   : > { %s182_s9 = ssub.s32 %s877_s27, %s949_s30  ;;  %p195_p0 = scmp.ne.s32.totalorder %s873_s26, %s869_s25 }
   0x6   : > { %p183_p1 = scmp.eq.s32.totalorder %s182_s9, 0  ;;  %p196_p2 = scmp.eq.s32.totalorder %s945_s28, 1 }
   0x7   : > { %p201_p3 = scmp.ne.s32.totalorder %s869_s25, %s865_s24  ;;  %p202_p4 = scmp.eq.s32.totalorder %s693_s29, 1 }
   0x8   : > { %s960_s10 = scalar_select %p183_p1, %s873_s26, %s185_s8  }
   0x9   : > { %p962_p5 = por %p196_p2, %p195_p0  ;;  %p966_p6 = por %p202_p4, %p201_p3 }
   0xa   : > { %p696_p7 = scmp.ge.s32.totalorder %s877_s27, 1  ;;  %p243_p8 = scmp.lt.s32.totalorder %s877_s27, 3 }
   0xc   : > { %p244_p9 = pnand %p696_p7, %p243_p8 }
   0xd   : > { %p280_p10 = scmp.lt.s32.totalorder (!%p244_p9), %s945_s28, 1  ;;  %v801_v0 = vld [vmem:[%s1082_s1] sm:$0xff] (!%p244_p9)   ;;  %vm349_vm0 = vcmask (!%p244_p9), 293888   ;;  %v879_v2 = vmov (!%p244_p9), 0   ;;  %v301_v3 = vld [vmem:[%s1083_s2 + $0x8] sm:$0xff] (!%p244_p9)  ;;  %v302_v4 = vld [vmem:[%s1083_s2 + $0x10] sm:$0xff] (!%p244_p9)  ;;  %v568_v47 = vlaneseq (!%p244_p9) }
   0xe   : > { %247 = sbr.rel (%p244_p9) target bundleno = 718 (0x2ce), region = 44  ;;  %v300_v1 = vld [vmem:[%s1083_s2] sm:$0xff] (!%p244_p9)  ;;  %739 = vmatprep.mubr.msk.bf16.mxu0 (!%p244_p9), %vm349_vm0, %v801_v0  ;;  %796 = vset.pattern.permute.xlu0 (!%p244_p9), %v879_v2  ;;  %v303_v5 = vld [vmem:[%s1083_s2 + $0x18] sm:$0xff] (!%p244_p9)  ;;  %vm356_vm1 = vcmask (!%p244_p9), 1041408   ;;  %v802_v11 = vld [vmem:[%s1082_s1 + $0x8] sm:$0xff] (!%p244_p9)   ;;  %v880_v12 = vmov (!%p244_p9), 0.0  }
   0xf   : > { %306 = vperm.xlu0 (!%p244_p9), %796, %v300_v1   ;;  %797 = vset.pattern.permute.xlu1 (!%p244_p9), %v879_v2  ;;  %v469_v8 = vld [vmem:[%s1085_s4] sm:$0x3f] (!%p244_p9)  ;;  %vm881_vm2 = vmmov (!%p244_p9), 0   ;;  %v806_v15 = vld [vmem:[%s1086_s5 + $0x14] ss:$8 sps:$4 sm:$0xff] (!%p244_p9)   ;;  %vm416_vm3 = vcmask (!%p244_p9), 261120  }
  0x10   : > { %316 = vperm.xlu1 (!%p244_p9), %797, %v302_v4   ;;  %551 = vmatprep.mubr.bf16.mxu1 (!%p244_p9), %v879_v2  ;;  %v803_v13 = vld [vmem:[%s1086_s5 + $0x4] ss:$8 sps:$4 sm:$0xff] (!%p244_p9)   ;;  %v805_v14 = vld [vmem:[%s1086_s5] ss:$8 sps:$4 sm:$0xff] (!%p244_p9)   ;;  %v808_v16 = vld [vmem:[%s1086_s5 + $0x10] ss:$8 sps:$4 sm:$0xff] (!%p244_p9)  }
  0x11   : > { %519 = vmatprep.subr.bf16.mxu1 (!%p244_p9), %v803_v13  ;;  %v809_v17 = vld [vmem:[%s1086_s5 + $0x24] ss:$8 sps:$4 sm:$0xff] (!%p244_p9)   ;;  %v811_v18 = vld [vmem:[%s1086_s5 + $0x20] ss:$8 sps:$4 sm:$0xff] (!%p244_p9)   ;;  %v812_v19 = vld [vmem:[%s1086_s5 + $0x34] ss:$8 sps:$4 sm:$0xff] (!%p244_p9)  }
  0x12   : > { %520 = vmatpush1.bf16.msra.mxu1 (!%p244_p9), %v805_v14  ;;  %v415_v38 = vld [vmem:[%s1084_s3] sm:$0x7] (!%p244_p9)  ;;  %v814_v39 = vld [vmem:[%s1086_s5 + $0x30] ss:$8 sps:$4 sm:$0xff] (!%p244_p9)   ;;  %vm515_vm4 = vcmask (!%p244_p9), 523264   ;;  %v569_v49 = vshrl.u32 (!%p244_p9), %v568_v47, 7 }
  0x13   : > { %311 = vperm.xlu0 (!%p244_p9), %796, %v301_v3   ;;  %521 = vmatprep.subr.bf16.mxu1 (!%p244_p9), %v806_v15  ;;  %v882_v45 = vmov (!%p244_p9), 1966171168   ;;  %vm583_vm5 = vcmp.lt.s32.totalorder (!%p244_p9), %v568_v47, 256 }
  0x14   : > { %321 = vperm.xlu1 (!%p244_p9), %797, %v303_v5   ;;  %v566_v46 = vunpack.c.l.s4 (!%p244_p9), %v882_v45 }
  0x15   : > { %s977_s15 = scalar_select %p280_p10, %s945_s28, 1 }
  0x16   : > { %522 = vmatpush1.bf16.msra.mxu1 %v808_v16  ;;  %v567_v48 = vunpack.c.0.s8 %v566_v46 }
  0x17   : > { %s752_s22 = smul.u32 20, %s977_s15  ;;  %472 = vperm.xlu0 %796, %v469_v8   ;;  %523 = vmatprep.subr.bf16.mxu1 %v809_v17  ;;  %s723_s29 = sshll.u32 %s977_s15, 4 }
  0x18   : > { %s289_s14 = scalar_lea.vmem %s1087_s6, %s723_s29  ;;  %v570_v55 = vsub.s32 %v567_v48, %v569_v49  ;;  %s724_s15 = sshll.u32 %s945_s28, 5 }
  0x19   : > { %s284_s8 = scalar_lea.vmem %s1081_s0, %s752_s22  ;;  %s1039_s21 = scalar_lea.hbm %s1088_s7, %s724_s15 }
  0x1a   : > { %v798_v6 = vld [vmem:[%s284_s8] sm:$0xff]   ;;  %v799_v7 = vld [vmem:[%s284_s8 + $0x8] sm:$0xff]   ;;  %v800_v9 = vld [vmem:[%s284_s8 + $0x10] ss:$0 sps:$4 sm:$0x33]   ;;  %524 = vmatpush1.bf16.msra.mxu1 %v811_v18  ;;  %s277_s8 = sand.u32 1, %s869_s25  }
  0x1b   : > { %733 = vmatprep.subr.bf16.mxu0 %v798_v6  ;;  %v358_v10 = vsel %vm356_vm1, %v800_v9, 0  ;;  %525 = vmatprep.subr.bf16.mxu1 %v812_v19  ;;  %s697_s16 = sshll.u32 %s277_s8, 1  ;;  %s592_s22 = scalar_lea.sflag [#allocation3], %s277_s8 }
  0x1c   : > { %734 = vmatpush3.bf16.msra.mxu0 %v798_v6  ;;  %s279_s17 = scalar_lea.vmem [#allocation2], %s697_s16  ;;  %s883_s28 = smov [#allocation2]  }
  0x1d   : > { %735 = vmatprep.subr.bf16.mxu0 %v799_v7  ;;  %s609_s18 = sshll.u32 %s279_s17, 4  ;;  %s819_s29 = sshll.u32 %s883_s28, 4  ;;  %s1041_s18 = int_to_ptr.vmem [resolvable:$true] %s609_s18  ;;  %s820_s29 = int_to_ptr.vmem [resolvable:$false] %s819_s29 }
  0x1e   : > { %526 = vmatpush1.bf16.msra.mxu1 %v814_v39  ;;  %s815_s23 = scalar_lea.vmem %s1041_s18, 32  ;;  %s821_s9 = scalar_lea.vmem %s820_s29, 64 }
  0x1f   : > { %p816_p11 = scmp.ne.s32.totalorder %s1041_s18, %s815_s23  ;;  %p822_p0 = scmp.lt.s32.totalorder %s1041_s18, %s820_s29 }
  0x20   : > { %736 = vmatpush3.bf16.msra.mxu0 %v799_v7  ;;  %p823_p1 = scmp.lt.s32.totalorder %s821_s9, %s815_s23 }
  0x21   : > { %751 = vmatprep.subr.msk.bf16.mxu0 %vm356_vm1, %v800_v9  ;;  %p817_p12 = pnand %p816_p11, %p962_p5 }
  0x22   : > { %p824_p2 = por %p823_p1, %p822_p0 }
  0x23   : > { %p818_p13 = pneg %p817_p12 }
  0x24   : > { %738 = vmatpush3.bf16.msra.mxu0 %v358_v10 }
  0x25   : > { %743 = vmatprep.subr.bf16.mxu0 %v880_v12  ;;  %p825_p3 = pnand %p824_p2, %p818_p13 }
  0x27   : > { %740 = vmatmul.mubr.msk.bf16.vlgmr.msra.gmra.mrb[0].mxu0 %vm349_vm0, %v802_v11 }
  0x28   : > { %747 = vmatprep.mubr.msk.bf16.mxu0 %vm881_vm2, %v880_v12 }
  0x8e   : > { %v307_v21 = vpop.permute.xlu0 %306 }
  0x8f   : > { %v317_v20 = vpop.permute.xlu1 %316 }
  0x92   : > { %v312_v28 = vpop.permute.xlu0 %311 }
  0x93   : > { %v322_v23 = vpop.permute.xlu1 %321 }
  0x96   : > { %v473_v50 = vpop.permute.xlu0 %472 }
  0xfa   : > { %v741_v22 = vpop.f32.mrb[0].mxu0 }
  0xfb   : > { %v403_v24 = vadd.f32 %v741_v22, %v317_v20  ;;  %v394_v25 = vpop.f32.mrb[1].mxu0 }
  0xfc   : > { %v395_v26 = vadd.f32 %v394_v25, %v307_v21  ;;  %v742_v27 = vpop.f32.mrb[2].mxu0 }
  0xfd   : > { %v406_v29 = vadd.f32 %v742_v27, %v322_v23  ;;  %v397_v30 = vpop.f32.mrb[3].mxu0  ;;  %v411_v32 = vmax.f32 %v403_v24, 0.0 }
  0xfe   : > { %v398_v31 = vadd.f32 %v397_v30, %v312_v28  ;;  %v409_v34 = vmax.f32 %v395_v26, 0.0 }
  0xff   : > { %v412_v33 = vmax.f32 %v406_v29, 0.0 }
 0x100   : > { %v410_v35 = vmax.f32 %v398_v31, 0.0 }
 0x101   : > { %v414_v36 = vpack.c.bf16 %v412_v33, %v411_v32 }
 0x102   : > { %v413_v37 = vpack.c.bf16 %v410_v35, %v409_v34 }
 0x104   : > { %744 = vmatpush3.bf16.msra.mxu0 %v413_v37 }
 0x105   : > { %745 = vmatprep.subr.bf16.mxu0 %v880_v12 }
 0x108   : > { %746 = vmatpush3.bf16.msra.mxu0 %v414_v36 }
 0x10b   : > { %748 = vmatmul.mubr.msk.bf16.vlgmr.msra.gmra.mrb[4].mxu0 %vm416_vm3, %v415_v38 }
 0x1de   : > { %v454_v40 = vpop.f32.mrb[4].mxu0 }
 0x1df   : > { %v460_v41 = vpack.c.bf16 %v454_v40, %v454_v40  ;;  %v749_v42 = vpop.f32.mrb[5].mxu0 }
 0x1e0   : > { %v457_v43 = vpop.f32.mrb[6].mxu0 }
 0x1e1   : > { %v750_v44 = vpop.f32.mrb[7].mxu0  ;;  %717 = vmatmul.mubr.msk.bf16.vlgmr.msra.gmra.mrb[0].mxu1 %vm515_vm4, %v460_v41 }
 0x2b4   : > { %v553_v51 = vpop.f32.mrb[0].mxu1 }
 0x2b5   : > { %v554_v52 = vadd.f32 %v553_v51, %v473_v50  ;;  %v555_v53 = vpop.f32.mrb[1].mxu1 }
 0x2b6   : > { %v556_v54 = vadd.f32 %v555_v53, %v473_v50  ;;  %v557_v56 = vpop.f32.mrb[2].mxu1 }
 0x2b7   : > { %560 = vst [vmem:[%s289_s14] sm:$0x1f] %v554_v52  ;;  %v558_v57 = vpop.f32.mrb[3].mxu1 }
 0x2b8   : > { %561 = vst [vmem:[%s289_s14 + $0x8] sm:$0x1f] %v556_v54  ;;  %v564_v58 = vcombine.high %v554_v52, %v556_v54 }
 0x2ba   : > { %v571_v59 = vrot.slane %v564_v58, %v570_v55 }
 0x2bc   : > { %v572_v60 = vcombine.high %v571_v59, %v571_v59 }
 0x2be   : > { %v579_v61 = vrot.slane %v572_v60, %v570_v55 }
 0x2c0   : > { %585 = vst.msk [vmem:[%s279_s17] sm:$0x3] %vm583_vm5, %v579_v61 }
 0x2c1   : > { %828 = shalt.err (!%p825_p3)
}
 0x2c2   : > { %s829_s8 = scalar_lea.hbm %s1039_s21, 32  ;;  %s833_s16 = scalar_lea.hbm %s1088_s7, 64 }
 0x2c3   : > { %p830_p4 = scmp.ne.s32.totalorder %s1039_s21, %s829_s8  ;;  %p834_p9 = scmp.lt.u32.totalorder %s1039_s21, %s1088_s7 }
 0x2c4   : > { %p835_p10 = scmp.lt.u32.totalorder %s833_s16, %s829_s8  ;;  %p837_p12 = scmp.lt.u32.totalorder %s829_s8, %s1039_s21 }
 0x2c5   : > { %p831_p7 = pnand %p830_p4, %p962_p5 }
 0x2c6   : > { %p836_p11 = por %p835_p10, %p834_p9 }
 0x2c7   : > { %p832_p8 = pneg %p831_p7 }
 0x2c8   : > { %p838_p13 = por %p837_p12, %p836_p11 }
 0x2ca   : > { %p839_p0 = pnand %p838_p13, %p832_p8 }
 0x2cc   : > { %842 = shalt.err (!%p839_p0)
}
 0x2cd   : > { %753 = dma.vmem_to_hbm [thread:$0]  (%p962_p5), %s1041_s18, 32, %s1039_s21, %s592_s22  }
 0x2ce PF: > { %p759_p1 = scmp.ge.s32.totalorder %s877_s27, 2  ;;  %s629_s19 = sand.u32 1, %s865_s24  }
 0x2cf   : > { %s630_s20 = scalar_lea.sflag [#allocation3], %s629_s19 }
 0x2d0   : > { %p756_p2 = pnand %p759_p1, %p966_p6 }
 0x2d2   : > { %860 = dma.done.wait (!%p756_p2), %s630_s20, 32  }
 0x2d3   : > { %862 = vsyncadd (!%p756_p2), %s630_s20, 4294967264  ;;  %p18_p3 = scmp.ge.s32.totalorder %s949_s30, 4   ;;  %s1091_s24 = smov %s869_s25 }
 0x2d4   : > { %s1092_s25 = smov %s873_s26  ;;  %s1093_s26 = smov %s960_s10 }
 0x2d5   : > { %s1094_s27 = smov %s949_s30  ;;  %20 = sbr.rel (!%p18_p3) target bundleno = 3 (0x3), region = 91 }
 0x2dc   :  { %635 = vsyncpa [#allocation3], 1 }
 0x2dd   :  { %637 = vsyncpa [#allocation3 + $0x1], 1 }

</bundles_post_ra>
